<compile_context>
chip_gen: v6e
topology: v6e:2x2x1
jax: 0.10.0
libtpu: 0.0.40
codegen_flags: <defaults>
</compile_context>

<pallas_src>
import jax
import jax.numpy as jnp
from jax.experimental import pallas as pl
from jax.experimental.pallas import tpu as pltpu

LANE = 128      # TPU lane width (last-dim tiling unit)
SUBLANE = 8     # TPU sublane width (second-last-dim tiling unit)


def _round_up(n, m):
    return ((n + m - 1) // m) * m


def mlp_kernel(x_ref, w1_ref, b1_ref, w2_ref, b2_ref, o_ref):
    # Fused Linear -> ReLU -> Linear on one batch tile; all operands resident in VMEM,
    # both matmuls on the MXU with f32 accumulation.
    x = x_ref[...]                        # (Bm, D_in)
    b1 = b1_ref[...]                      # (1, H)      loaded once per tile
    b2 = b2_ref[...]                      # (1, N_pad)  loaded once per tile
    h = jnp.dot(x, w1_ref[...], preferred_element_type=jnp.float32)
    h = jnp.maximum(h + b1, 0.0)          # bias folded into the ReLU input (f32 VPU math)
    # NOTE: if w2 is ever stored in bf16 this downcasts the ReLU output for the MXU;
    # accumulation stays f32 via preferred_element_type.
    y = jnp.dot(h.astype(w2_ref.dtype), w2_ref[...],
                preferred_element_type=jnp.float32) + b2
    o_ref[...] = y.astype(o_ref.dtype)


def my_sequential(x, w1, b1, w2, b2, *, block_b=512):
    """Pallas equivalent of MySequential(nn.Linear(D_in, H), nn.ReLU(), nn.Linear(H, D_out)).

    x:  (B, D_in)
    w1: (D_in, H)    b1: (H,) or (1, H)
    w2: (H, D_out)   b2: (D_out,) or (1, D_out)
    """
    B, D_in = x.shape
    H = w1.shape[1]
    D_out = w2.shape[1]

    b1 = b1.reshape(1, H)
    b2 = b2.reshape(1, D_out)

    # --- Lane-dense output: pad D_out to a multiple of 128 so stores are unmasked vst. ---
    N_pad = _round_up(D_out, LANE)
    if N_pad != D_out:
        w2p = jnp.zeros((H, N_pad), w2.dtype).at[:, :D_out].set(w2)
        b2p = jnp.zeros((1, N_pad), b2.dtype).at[:, :D_out].set(b2)
    else:
        w2p, b2p = w2, b2

    # --- Batch tiling: pad B to a multiple of the batch tile; ragged tail handled by padding. ---
    Bm = _round_up(min(block_b, _round_up(B, SUBLANE)), SUBLANE)
    B_pad = _round_up(B, Bm)
    xp = x if B_pad == B else jnp.zeros((B_pad, D_in), x.dtype).at[:B, :].set(x)

    grid = (B_pad // Bm,)

    out = pl.pallas_call(
        mlp_kernel,
        out_shape=jax.ShapeDtypeStruct((B_pad, N_pad), x.dtype),
        grid=grid,
        in_specs=[
            pl.BlockSpec((Bm, D_in), lambda i: (i, 0)),   # streamed activations
            pl.BlockSpec((D_in, H), lambda i: (0, 0)),    # W1 resident across batch tiles
            pl.BlockSpec((1, H), lambda i: (0, 0)),       # b1 resident
            pl.BlockSpec((H, N_pad), lambda i: (0, 0)),   # W2 (lane-padded) resident
            pl.BlockSpec((1, N_pad), lambda i: (0, 0)),   # b2 (lane-padded) resident
        ],
        out_specs=pl.BlockSpec((Bm, N_pad), lambda i: (i, 0)),
        compiler_params=pltpu.CompilerParams(
            # Batch rows are independent -> allow megacore split on v7x.
            dimension_semantics=("parallel",),
        ),
    )(xp, w1, b1, w2p, b2p)

    # Slice away batch padding and lane padding outside the kernel.
    return out[:B, :D_out]


def reference(x, w1, b1, w2, b2):
    h = jnp.maximum(x @ w1 + b1, 0.0)
    return h @ w2 + b2


if __name__ == "__main__":
    # Small shapes consistent with the classic MySequential MLP usage.
    B, D_in, H, D_out = 16, 32, 64, 16

    key = jax.random.PRNGKey(0)
    kx, kw1, kb1, kw2, kb2 = jax.random.split(key, 5)

    x = jax.random.normal(kx, (B, D_in), dtype=jnp.float32)

    # Deterministic "nn.Linear"-style init (uniform in +-1/sqrt(fan_in)),
    # weights stored already-transposed to (in, out).
    lim1 = 1.0 / jnp.sqrt(jnp.float32(D_in))
    lim2 = 1.0 / jnp.sqrt(jnp.float32(H))
    w1 = jax.random.uniform(kw1, (D_in, H), jnp.float32, -lim1, lim1)
    b1 = jax.random.uniform(kb1, (1, H), jnp.float32, -lim1, lim1)
    w2 = jax.random.uniform(kw2, (H, D_out), jnp.float32, -lim2, lim2)
    b2 = jax.random.uniform(kb2, (1, D_out), jnp.float32, -lim2, lim2)

    # Small batch tile (8 rows) -> grid of 2 batch steps, exercising the real tiling path
    # (weights resident, activations streamed). Larger batches use the default 512-row tile.
    out = my_sequential(x, w1, b1, w2, b2, block_b=8)
    out = jax.block_until_ready(out)

    ref = reference(x, w1, b1, w2, b2)
    assert out.shape == (B, D_out)
    assert jnp.allclose(out, ref, atol=1e-5, rtol=1e-5)

    print("KERNEL_OK")
</pallas_src>

<mosaic_0001>
module attributes {stable_mosaic.version = 11 : i64} {
  func.func @mlp_kernel(%arg0: i32, %arg1: memref<8x32xf32, #tpu.memory_space<vmem>>, %arg2: memref<32x64xf32, #tpu.memory_space<vmem>>, %arg3: memref<1x64xf32, #tpu.memory_space<vmem>>, %arg4: memref<64x128xf32, #tpu.memory_space<vmem>>, %arg5: memref<1x128xf32, #tpu.memory_space<vmem>>, %arg6: memref<8x128xf32, #tpu.memory_space<vmem>>) attributes {dimension_semantics = [#tpu.dimension_semantics<parallel>], iteration_bounds = array<i64: 2>, scalar_prefetch = 0 : i64, scratch_operands = 0 : i64, tpu.core_type = #tpu.core_type<tc>, window_params = [{transform_indices = @transform_0, window_bounds = array<i64: 8, 32>}, {pipeline_mode = #tpu.pipeline_mode<synchronous>, transform_indices = @transform_1, window_bounds = array<i64: 32, 64>}, {pipeline_mode = #tpu.pipeline_mode<synchronous>, transform_indices = @transform_2, window_bounds = array<i64: 1, 64>}, {pipeline_mode = #tpu.pipeline_mode<synchronous>, transform_indices = @transform_3, window_bounds = array<i64: 64, 128>}, {pipeline_mode = #tpu.pipeline_mode<synchronous>, transform_indices = @transform_4, window_bounds = array<i64: 1, 128>}, {transform_indices = @transform_5, window_bounds = array<i64: 8, 128>}]} {
    %c0 = arith.constant 0 : index
    %c0_0 = arith.constant 0 : index
    %0 = vector.load %arg1[%c0, %c0_0] : memref<8x32xf32, #tpu.memory_space<vmem>>, vector<8x32xf32>
    %c0_1 = arith.constant 0 : index
    %c0_2 = arith.constant 0 : index
    %1 = vector.load %arg3[%c0_1, %c0_2] : memref<1x64xf32, #tpu.memory_space<vmem>>, vector<1x64xf32>
    %c0_3 = arith.constant 0 : index
    %c0_4 = arith.constant 0 : index
    %2 = vector.load %arg5[%c0_3, %c0_4] : memref<1x128xf32, #tpu.memory_space<vmem>>, vector<1x128xf32>
    %c0_5 = arith.constant 0 : index
    %c0_6 = arith.constant 0 : index
    %3 = vector.load %arg2[%c0_5, %c0_6] : memref<32x64xf32, #tpu.memory_space<vmem>>, vector<32x64xf32>
    %cst = arith.constant dense<0.000000e+00> : vector<8x64xf32>
    %4 = tpu.matmul %0, %3, %cst {dimension_numbers = #tpu.dot_dimension_numbers<[1], [0], [0], [1], [0, 0, 1, 1], [], []>} : vector<8x32xf32>, vector<32x64xf32>, vector<8x64xf32> -> vector<8x64xf32>
    %5 = vector.broadcast %1 : vector<1x64xf32> to vector<8x64xf32>
    %6 = arith.addf %4, %5 : vector<8x64xf32>
    %cst_7 = arith.constant 0.000000e+00 : f32
    %7 = vector.broadcast %cst_7 : f32 to vector<8x64xf32>
    %8 = arith.maximumf %6, %7 : vector<8x64xf32>
    %c0_8 = arith.constant 0 : index
    %c0_9 = arith.constant 0 : index
    %9 = vector.load %arg4[%c0_8, %c0_9] : memref<64x128xf32, #tpu.memory_space<vmem>>, vector<64x128xf32>
    %cst_10 = arith.constant dense<0.000000e+00> : vector<8x128xf32>
    %10 = tpu.matmul %8, %9, %cst_10 {dimension_numbers = #tpu.dot_dimension_numbers<[1], [0], [0], [1], [0, 0, 1, 1], [], []>} : vector<8x64xf32>, vector<64x128xf32>, vector<8x128xf32> -> vector<8x128xf32>
    %11 = vector.broadcast %2 : vector<1x128xf32> to vector<8x128xf32>
    %12 = arith.addf %10, %11 : vector<8x128xf32>
    %c0_11 = arith.constant 0 : index
    %c0_12 = arith.constant 0 : index
    %13 = vector.load %arg6[%c0_11, %c0_12] : memref<8x128xf32, #tpu.memory_space<vmem>>, vector<8x128xf32>
    tpu.vector_store %arg6[%c0_11, %c0_12], %12 {strides = array<i32>} : memref<8x128xf32, #tpu.memory_space<vmem>>, vector<8x128xf32>,
    return
  }
  func.func @transform_0(%arg0: i32) -> (i32, i32) {
    %c0_i32 = arith.constant 0 : i32
    %c0_i32_0 = arith.constant 0 : i32
    return %arg0, %c0_i32 : i32, i32
  }
  func.func @transform_1(%arg0: i32) -> (i32, i32) {
    %c0_i32 = arith.constant 0 : i32
    %c0_i32_0 = arith.constant 0 : i32
    %c0_i32_1 = arith.constant 0 : i32
    return %c0_i32, %c0_i32_0 : i32, i32
  }
  func.func @transform_2(%arg0: i32) -> (i32, i32) {
    %c0_i32 = arith.constant 0 : i32
    %c0_i32_0 = arith.constant 0 : i32
    %c0_i32_1 = arith.constant 0 : i32
    return %c0_i32, %c0_i32_0 : i32, i32
  }
  func.func @transform_3(%arg0: i32) -> (i32, i32) {
    %c0_i32 = arith.constant 0 : i32
    %c0_i32_0 = arith.constant 0 : i32
    %c0_i32_1 = arith.constant 0 : i32
    return %c0_i32, %c0_i32_0 : i32, i32
  }
  func.func @transform_4(%arg0: i32) -> (i32, i32) {
    %c0_i32 = arith.constant 0 : i32
    %c0_i32_0 = arith.constant 0 : i32
    %c0_i32_1 = arith.constant 0 : i32
    return %c0_i32, %c0_i32_0 : i32, i32
  }
  func.func @transform_5(%arg0: i32) -> (i32, i32) {
    %c0_i32 = arith.constant 0 : i32
    %c0_i32_0 = arith.constant 0 : i32
    return %arg0, %c0_i32 : i32, i32
  }
}

</mosaic_0001>

<bundles_post_ra>
// kernel: tpu_custom_call.1
= control target key start
LH: loop header
LB: loop body
LE: loop exit
PB: predicated region body
PF: predicated region fallthrough
CT: control target
= control target key end

     0   :  { %10 = vsyncpa [#allocation3], 0  ;;  %s1053_s0 = inlined_call_operand.hbm [shape: f32[16,32], index: 0, kind: input, shape index: {}]   ;;  %s1054_s1 = inlined_call_operand.hbm [shape: f32[32,64], index: 1, kind: input, shape index: {}]   ;;  %s1055_s2 = inlined_call_operand.vmem [shape: f32[1,64], index: 2, kind: input, shape index: {}]   ;;  %s1056_s3 = inlined_call_operand.hbm [shape: f32[64,128], index: 3, kind: input, shape index: {}]   ;;  %s1057_s4 = inlined_call_operand.vmem [shape: f32[1,128], index: 4, kind: input, shape index: {}]   ;;  %s1058_s5 = inlined_call_operand.hbm [shape: f32[16,128], index: 5, kind: output, shape index: {}]  }
   0x1   :  { %12 = vsyncpa [#allocation3 + $0x1], 0 }
   0x2   :  { %13 = vsyncpa [#allocation6], 0 }
   0x3   :  { %14 = vsyncpa [#allocation4], 0 }
   0x4   :  { %16 = vsyncpa [#allocation4 + $0x1], 0  ;;  %s872_s18 = smov 0   ;;  %s874_s19 = smov 0  }
   0x5   :  { %s876_s20 = smov 0   ;;  %s878_s21 = smov 0  }
   0x6 LB: > { %s893_s22 = sadd.s32 4294967295, %s832_s21   ;;  %s549_s23 = sadd.s32 4294967294, %s832_s21   ;;  %s832_s21 = sphi %s878_s21, %s1080_s21   ;;  %s828_s20 = sphi %s876_s20, %s1079_s20   ;;  %s824_s19 = sphi %s874_s19, %s1078_s19   ;;  %s820_s18 = sphi %s872_s18, %s1077_s18  }
   0x7   : > { %p42_p0 = scmp.ne.s32.totalorder %s824_s19, %s820_s18  ;;  %p1059_p1 = scmp.eq.s32.totalorder %s893_s22, 0 }
   0x8   : > { %p156_p3 = scmp.eq.s32.totalorder %s549_s23, 1  ;;  %p550_p5 = scmp.ge.s32.totalorder %s832_s21, 1 }
   0x9   : > { %p902_p4 = por %p1059_p1, %p42_p0  ;;  %p163_p7 = scmp.lt.s32.totalorder %s832_s21, 3 }
   0xa   : > { %p907_p6 = por %p156_p3, %p42_p0  ;;  %s834_s27 = smov [#allocation5]  }
   0xb   : > { %s1063_s24 = scalar_select %p902_p4, 1, 0 }
   0xc   : > { %s1064_s25 = scalar_select %p907_p6, 1, 0 }
   0xd   : > { %p912_p8 = pnand %p550_p5, %p163_p7  ;;  %s175_s28 = sshll.u32 %s834_s27, 4  ;;  %s176_s28 = int_to_ptr.vmem [resolvable:$true] %s175_s28 }
   0xe   : > { %s835_s30 = smov [#allocation7]   ;;  %s695_s7 = scalar_lea.vmem %s176_s28, 512 }
   0xf   : > { %s1065_s26 = scalar_select %p912_p8, 1, 0 }
  0x10   : > { %p625_p9 = pneg %p912_p8  ;;  %s191_s6 = sshll.u32 %s835_s30, 4  ;;  %s192_s6 = int_to_ptr.vmem [resolvable:$true] %s191_s6 }
  0x11   : > { %p696_p13 = scmp.ne.s32.totalorder %s176_s28, %s695_s7  ;;  %p703_p5 = scmp.lt.s32.totalorder %s176_s28, %s176_s28 }
  0x12   : > { %p921_p11 = pnand %p625_p9, %p1059_p1  ;;  %p704_p7 = scmp.lt.s32.totalorder %s695_s7, %s695_s7 }
  0x14   : > { %p686_p12 = pneg %p921_p11  ;;  %p705_p10 = por %p704_p7, %p703_p5 }
  0x16   : > { %p698_p0 = pnand %p696_p13, %p686_p12 }
  0x18   : > { %p699_p3 = pneg %p698_p0 }
  0x1a   : > { %p706_p9 = pnand %p705_p10, %p699_p3 }
  0x1c   : > { %709 = shalt.err (!%p706_p9)
}
  0x1d   : > { %s836_s8 = smov 128   ;;  %s837_s9 = smov 8  }
  0x1e   : > { %628 = dma.hbm_to_vmem [thread:$0]  (!%p921_p11), %s1054_s1, 512, %s176_s28, [#allocation6], %s836_s8, %s836_s8, %s837_s9  }
  0x1f   : > { %s721_s12 = scalar_lea.vmem %s192_s6, 1024  ;;  %p729_p2 = scmp.lt.s32.totalorder %s192_s6, %s192_s6 }
  0x20   : > { %p722_p1 = scmp.ne.s32.totalorder %s192_s6, %s721_s12  ;;  %p730_p6 = scmp.lt.s32.totalorder %s721_s12, %s721_s12 }
  0x22   : > { %p724_p13 = pnand %p722_p1, %p686_p12  ;;  %p731_p5 = por %p730_p6, %p729_p2 }
  0x24   : > { %p725_p0 = pneg %p724_p13 }
  0x26   : > { %p732_p10 = pnand %p731_p5, %p725_p0 }
  0x28   : > { %735 = shalt.err (!%p732_p10)
}
  0x29   : > { %631 = dma.hbm_to_vmem [thread:$0]  (!%p921_p11), %s1056_s3, 1024, %s192_s6, [#allocation6], %s836_s8, %s836_s8, %s837_s9  }
  0x2a   : > { %s944_s15 = sadd.s32 1, %s832_s21   ;;  %s29_s16 = sadd.s32 1, %s828_s20 }
  0x2b   : > { %s26_s17 = ssub.s32 %s832_s21, %s944_s15  ;;  %p36_p1 = scmp.ne.s32.totalorder %s828_s20, %s824_s19 }
  0x2c   : > { %p27_p2 = scmp.eq.s32.totalorder %s26_s17, 0  ;;  %p37_p6 = scmp.eq.s32.totalorder %s832_s21, 0 }
  0x2d   : > { %p1067_p12 = scmp.eq.s32.totalorder %s893_s22, 1  ;;  %p642_p7 = scmp.lt.s32.totalorder %s832_s21, 2 }
  0x2e   : > { %s960_s27 = scalar_select %p27_p2, %s828_s20, %s29_s16  }
  0x2f   : > { %p954_p3 = por %p1067_p12, %p36_p1  ;;  %p38_p9 = por %p37_p6, %p36_p1 }
  0x30   : > { %s208_s28 = sand.u32 1, %s828_s20   ;;  %s555_s30 = sshll.u32 %s832_s21, 7 }
  0x31   : > { %s1068_s23 = scalar_select %p954_p3, 1, 0 }
  0x32   : > { %s554_s29 = sshll.u32 %s208_s28, 3  ;;  %s967_s8 = scalar_lea.hbm %s1053_s0, %s555_s30 }
  0x33   : > { %s212_s9 = scalar_lea.vmem [#allocation2], %s554_s29  ;;  %p969_p11 = pnand %p642_p7, %p38_p9 }
  0x34   : > { %s219_s10 = sshll.u32 %s212_s9, 4  ;;  %s209_s12 = scalar_lea.sflag [#allocation3], %s208_s28  ;;  %s220_s10 = int_to_ptr.vmem [resolvable:$true] %s219_s10 }
  0x35   : > { %s736_s13 = scalar_lea.hbm %s967_s8, 128  ;;  %p738_p0 = pneg %p969_p11 }
  0x36   : > { %p737_p13 = scmp.ne.s32.totalorder %s967_s8, %s736_s13  ;;  %s741_s17 = scalar_lea.hbm %s1053_s0, 256 }
  0x37   : > { %p742_p1 = scmp.lt.s32.totalorder %s967_s8, %s1053_s0  ;;  %p743_p2 = scmp.lt.s32.totalorder %s741_s17, %s736_s13 }
  0x38   : > { %p739_p5 = pnand %p738_p0, %p737_p13 }
  0x39   : > { %p744_p6 = por %p743_p2, %p742_p1 }
  0x3a   : > { %p740_p10 = pneg %p739_p5 }
  0x3c   : > { %p745_p12 = pnand %p744_p6, %p740_p10 }
  0x3e   : > { %748 = shalt.err (!%p745_p12)
}
  0x3f   : > { %s749_s6 = scalar_lea.vmem %s220_s10, 128  ;;  %s838_s28 = smov [#allocation2]  }
  0x40   : > { %p750_p7 = scmp.ne.s32.totalorder %s220_s10, %s749_s6  ;;  %s754_s7 = sshll.u32 %s838_s28, 4  ;;  %s755_s7 = int_to_ptr.vmem [resolvable:$false] %s754_s7 }
  0x41   : > { %s756_s9 = scalar_lea.vmem %s755_s7, 256  ;;  %p757_p13 = scmp.lt.s32.totalorder %s220_s10, %s755_s7 }
  0x42   : > { %p752_p9 = pnand %p750_p7, %p738_p0  ;;  %p758_p5 = scmp.lt.s32.totalorder %s756_s9, %s749_s6 }
  0x44   : > { %p753_p3 = pneg %p752_p9  ;;  %p759_p4 = por %p758_p5, %p757_p13 }
  0x46   : > { %p760_p8 = pnand %p759_p4, %p753_p3 }
  0x48   : > { %763 = shalt.err (!%p760_p8)
}
  0x49   : > { %635 = dma.hbm_to_vmem [thread:$0]  (!%p969_p11), %s967_s8, 128, %s220_s10, %s209_s12  }
  0x4a   : > { %p1070_p10 = scmp.ne.s32.totalorder %s1065_s26, 0 }
  0x4b   : > { %s990_s13 = sand.u32 (!%p1070_p10), 1, %s824_s19   ;;  %p1071_p4 = scmp.ne.s32.totalorder (!%p1070_p10), %s1063_s24, 0 }
  0x4c   : > { %228 = sbr.rel (%p1070_p10) target bundleno = 500 (0x1f4), region = 40  ;;  %s557_s14 = sshll.u32 (!%p1070_p10), %s990_s13, 3 }
  0x4d   : > { %s231_s16 = scalar_lea.sflag (!%p1070_p10), [#allocation3], %s990_s13  ;;  %s234_s17 = scalar_lea.vmem (!%p1070_p10), [#allocation2], %s557_s14 }
  0x51   : > { %807 = dma.done.wait (%p1071_p4), %s231_s16, 128  }
  0x52   : > { %809 = vsyncadd (%p1071_p4), %s231_s16, 4294967168  ;;  %p1072_p8 = scmp.eq.s32.totalorder %s893_s22, 0 }
  0x54   : > { %811 = dma.done.wait (%p1072_p8), [#allocation6], 1536   ;;  %p1073_p3 = pmov %p1072_p8 }
  0x55   : > { %v839_v0 = vmov 0.0   ;;  %vm840_vm0 = vmmov 0   ;;  %v275_v1 = vld [vmem:[#allocation5 + $0x18] sm:$0xff]  ;;  %v274_v2 = vld [vmem:[#allocation5 + $0x10] sm:$0xff]  ;;  %v273_v4 = vld [vmem:[#allocation5 + $0x8] sm:$0xff]  ;;  %vm282_vm1 = vcmask 261120  }
  0x56   : > { %813 = vsyncadd (%p1073_p3), [#allocation6], 4294965760  ;;  %583 = vmatprep.subr.mxu0 %v839_v0  ;;  %591 = vmatprep.mubr.msk.f32.mxu0 %vm840_vm0, %v839_v0  ;;  %v364_v3 = vld [vmem:[#allocation7 + $0x38] sm:$0xff]  ;;  %v363_v5 = vld [vmem:[#allocation7 + $0x30] sm:$0xff]  ;;  %vm371_vm2 = vcmask 523264   ;;  %s566_s11 = sshll.u32 %s893_s22, 7 }
  0x57   : > { %594 = vmatprep.subr.mxu1 %v839_v0  ;;  %610 = vmatprep.mubr.msk.f32.mxu1 %vm840_vm0, %v839_v0  ;;  %v362_v6 = vld [vmem:[#allocation7 + $0x28] sm:$0xff]  ;;  %v272_v7 = vld [vmem:[#allocation5] sm:$0xff]  ;;  %v269_v8 = vld [vmem:[%s234_s17] sm:$0xff]  ;;  %s268_s12 = scalar_lea.vmem [#allocation8], %s557_s14  ;;  %s1016_s28 = scalar_lea.hbm %s1058_s5, %s566_s11 }
  0x58   : > { %584 = vmatpush3.msra.mxu0 %v275_v1  ;;  %595 = vmatpush3.msra.mxu1 %v364_v3  ;;  %v361_v9 = vld [vmem:[#allocation7 + $0x20] sm:$0xff]  ;;  %v360_v10 = vld [vmem:[#allocation7 + $0x18] sm:$0xff]  ;;  %v359_v11 = vld [vmem:[#allocation7 + $0x10] sm:$0xff]  ;;  %s460_s30 = sshll.u32 %s268_s12, 4  ;;  %s447_s7 = scalar_lea.sflag [#allocation4], %s990_s13  ;;  %s461_s30 = int_to_ptr.vmem [resolvable:$true] %s460_s30 }
  0x59   : > { %585 = vmatprep.subr.mxu0 %v839_v0  ;;  %596 = vmatprep.subr.mxu1 %v839_v0  ;;  %v358_v12 = vld [vmem:[#allocation7 + $0x8] sm:$0xff]  ;;  %v357_v13 = vld [vmem:[#allocation7] sm:$0xff]  ;;  %v561_v14 = vld [vmem:[%s1055_s2] ss:$0 sm:$0xff]  ;;  %s764_s9 = scalar_lea.vmem %s461_s30, 128  ;;  %p1074_p0 = scmp.ne.s32.totalorder %s1068_s23, 0 }
  0x5a   : > { %586 = vmatpush3.msra.mxu0 %v274_v2  ;;  %597 = vmatpush3.msra.mxu1 %v363_v5  ;;  %v563_v19 = vld [vmem:[%s1057_s4] ss:$0 sm:$0xff]  ;;  %p765_p11 = scmp.ne.s32.totalorder %s461_s30, %s764_s9  ;;  %s841_s22 = smov [#allocation8]  }
  0x5b   : > { %587 = vmatprep.subr.mxu0 %v839_v0  ;;  %598 = vmatprep.subr.mxu1 %v839_v0  ;;  %s768_s16 = sshll.u32 %s841_s22, 4  ;;  %s769_s16 = int_to_ptr.vmem [resolvable:$false] %s768_s16 }
  0x5c   : > { %588 = vmatpush3.msra.mxu0 %v273_v4  ;;  %599 = vmatpush3.msra.mxu1 %v362_v6  ;;  %p766_p1 = pnand %p765_p11, %p1074_p0  ;;  %s770_s14 = scalar_lea.vmem %s769_s16, 256 }
  0x5d   : > { %589 = vmatprep.subr.mxu0 %v839_v0  ;;  %600 = vmatprep.subr.mxu1 %v839_v0  ;;  %p771_p6 = scmp.lt.s32.totalorder %s461_s30, %s769_s16  ;;  %p772_p12 = scmp.lt.s32.totalorder %s770_s14, %s764_s9 }
  0x5e   : > { %590 = vmatpush3.msra.mxu0 %v272_v7  ;;  %601 = vmatpush3.msra.mxu1 %v361_v9  ;;  %p767_p2 = pneg %p766_p1 }
  0x5f   : > { %592 = vmatmul.mubr.msk.f32.vlgmr.msra.gmra.mxu0 %vm282_vm1, %v269_v8  ;;  %602 = vmatprep.subr.mxu1 %v839_v0  ;;  %p773_p7 = por %p772_p12, %p771_p6 }
  0x60   : > { %603 = vmatpush3.msra.mxu1 %v360_v10 }
  0x61   : > { %604 = vmatprep.subr.mxu1 %v839_v0  ;;  %p774_p9 = pnand %p773_p7, %p767_p2 }
  0x62   : > { %605 = vmatpush3.msra.mxu1 %v359_v11 }
  0x63   : > { %606 = vmatprep.subr.mxu1 %v839_v0 }
  0x64   : > { %607 = vmatpush3.msra.mxu1 %v358_v12 }
  0x65   : > { %608 = vmatprep.subr.mxu1 %v839_v0 }
  0x66   : > { %609 = vmatpush3.msra.mxu1 %v357_v13 }
 0x11f   : > { %v352_v15 = vpop.f32.mrf.mxu0 }
 0x120   : > { %v353_v16 = vadd.f32 %v561_v14, %v352_v15 }
 0x121   : > { %v593_v17 = vpop.f32.mrf.mxu0 }
 0x122   : > { %v356_v18 = vmax.f32 %v353_v16, 0.0 }
 0x124   : > { %611 = vmatmul.mubr.msk.f32.vlgmr.msra.gmra.mxu1 %vm371_vm2, %v356_v18 }
 0x1e4   : > { %v441_v20 = vpop.f32.mrf.mxu1 }
 0x1e5   : > { %v442_v21 = vadd.f32 %v563_v19, %v441_v20 }
 0x1e6   : > { %v612_v22 = vpop.f32.mrf.mxu1 }
 0x1e7   : > { %445 = vst [vmem:[%s268_s12] sm:$0xff] %v442_v21 }
 0x1e8   : > { %777 = shalt.err (!%p774_p9)
}
 0x1e9   : > { %s778_s17 = scalar_lea.hbm %s1016_s28, 128  ;;  %s782_s26 = scalar_lea.hbm %s1058_s5, 256 }
 0x1ea   : > { %p779_p13 = scmp.ne.s32.totalorder %s1016_s28, %s778_s17  ;;  %p783_p4 = scmp.lt.s32.totalorder %s1016_s28, %s1058_s5 }
 0x1eb   : > { %p784_p8 = scmp.lt.s32.totalorder %s782_s26, %s778_s17 }
 0x1ec   : > { %p780_p5 = pnand %p779_p13, %p1074_p0 }
 0x1ed   : > { %p785_p3 = por %p784_p8, %p783_p4 }
 0x1ee   : > { %p781_p10 = pneg %p780_p5 }
 0x1f0   : > { %p786_p11 = pnand %p785_p3, %p781_p10 }
 0x1f2   : > { %789 = shalt.err (!%p786_p11)
}
 0x1f3   : > { %623 = dma.vmem_to_hbm [thread:$0]  (%p1074_p0), %s461_s30, 128, %s1016_s28, %s447_s7  }
 0x1f4 PF: > { %s472_s11 = sand.u32 1, %s820_s18   ;;  %p1075_p1 = scmp.ne.s32.totalorder %s1064_s25, 0 }
 0x1f5   : > { %p1076_p2 = scmp.ge.s32.totalorder %s832_s21, 2  ;;  %s473_s12 = scalar_lea.sflag [#allocation4], %s472_s11 }
 0x1f7   : > { %p637_p6 = pnand %p1076_p2, %p1075_p1 }
 0x1f9   : > { %p638_p12 = pneg %p637_p6 }
 0x1fb   : > { %815 = dma.done.wait (%p638_p12), %s473_s12, 128  }
 0x1fc   : > { %817 = vsyncadd (%p638_p12), %s473_s12, 4294967168  ;;  %p19_p7 = scmp.ge.s32.totalorder %s944_s15, 4   ;;  %s1077_s18 = smov %s824_s19 }
 0x1fd   : > { %s1078_s19 = smov %s828_s20  ;;  %s1079_s20 = smov %s960_s27 }
 0x1fe   : > { %s1080_s21 = smov %s944_s15  ;;  %21 = sbr.rel (!%p19_p7) target bundleno = 6 (0x6), region = 93 }
 0x203   :  { %478 = vsyncpa [#allocation3], 1 }
 0x204   :  { %480 = vsyncpa [#allocation3 + $0x1], 1 }
 0x205   :  { %481 = vsyncpa [#allocation6], 1 }
 0x206   :  { %482 = vsyncpa [#allocation4], 1 }
 0x207   :  { %484 = vsyncpa [#allocation4 + $0x1], 1 }

</bundles_post_ra>
